<compile_context>
chip_gen: v6e
topology: v6e:2x2x1
jax: 0.10.0
libtpu: 0.0.40
codegen_flags: <defaults>
</compile_context>

<pallas_src>
import jax
import jax.numpy as jnp
from jax.experimental import pallas as pl
from jax.experimental.pallas import tpu as pltpu


def attention_kernel(q_ref, k_ref, wq_ref, wk_ref, bp_ref, h_ref,
                     vec_ref, attn_ref):
    TB, T, Dp = k_ref.shape

    q = q_ref[...]                                           # (TB, Dp)      bf16
    k = k_ref[...]                                           # (TB, T, Dp)   bf16

    # project_weight(cat(query, key)):  cat @ Wp^T == query @ Wq + key @ Wk
    qp = jnp.dot(q, wq_ref[...],
                 preferred_element_type=jnp.float32)         # (TB, Dp)    f32 acc
    kp = jnp.dot(k.reshape(TB * T, Dp), wk_ref[...],
                 preferred_element_type=jnp.float32)         # (TB*T, Dp)  f32 acc

    proj = kp.reshape(TB, T, Dp) + qp[:, None, :] + bp_ref[...]   # (TB, T, Dp)
    proj = jnp.maximum(proj, 0.0)                                 # torch.relu

    # attention_alpha = proj @ h   (N=1 -> VPU multiply + lane reduction over Dp;
    # padded lanes of h are zero so they contribute nothing).
    alpha = jnp.sum(proj * h_ref[...], axis=-1)              # (TB, T), T on lanes

    # softmax over the time axis (lane axis). Exact reciprocal: rows sum to 1.
    m = jnp.max(alpha, axis=-1, keepdims=True)               # (TB, 1)
    e = jnp.exp(alpha - m)                                   # (TB, T)
    inv = pl.reciprocal(jnp.sum(e, axis=-1, keepdims=True), approx=False)
    attn = e * inv                                           # (TB, T)
    attn_ref[...] = attn.astype(attn_ref.dtype)

    # attention_vec = sum_t key * attn  (padded lanes of key are zero -> stay zero)
    vec = jnp.sum(k.astype(jnp.float32) * attn[:, :, None], axis=1)   # (TB, Dp)
    vec_ref[...] = vec.astype(vec_ref.dtype)


def _round_up(x, m):
    return (x + m - 1) // m * m


def _tpu_vmem_and_cores():
    """Best-effort generation query: (VMEM capacity bytes, TensorCores per device)."""
    vmem_cap, cores = 64 << 20, 1          # conservative defaults (v7x: 64 MiB / TC)
    try:
        info = pltpu.get_tpu_info()
        vmem_cap = int(getattr(info, "vmem_capacity_bytes", vmem_cap))
        cores = int(getattr(info, "num_cores", cores) or cores)
    except Exception:
        pass
    return vmem_cap, cores


def _pick_block_batch(B, T, Dp, stream_itemsize, vmem_budget, num_cores):
    """Largest batch block (divisor of B, 8-aligned or == B) whose per-step working
    set fits the VMEM budget; on multi-TC parts prefer >= num_cores grid steps."""
    per_b = (T * Dp * (2 * stream_itemsize + 12)   # key double-buffer + f32 kp/proj/k32
             + Dp * (2 * stream_itemsize + 8)      # query block + vec out (double buffered)
             + T * 8)                              # attn out (double buffered)
    candidates = [d for d in range(1, B + 1)
                  if B % d == 0 and (d % 8 == 0 or d == B)]
    feasible = [d for d in candidates if d * per_b <= vmem_budget] or [min(candidates)]
    if num_cores >= 2:
        multi = [d for d in feasible if B // d >= num_cores]
        if multi:
            return max(multi)
    return max(feasible)


def attention_forward(query, key, wp, bp, h, *, block_batch=None,
                      matmul_dtype=jnp.bfloat16):
    """query: (B, D); key: (B, T, D); wp: (D, 2D) PyTorch-style Linear weight;
    bp: (D,); h: (D, 1). Returns (attention_vec (B, D), attention_weight (B, T, 1))."""
    B, T, D = key.shape
    assert query.shape == (B, D)
    out_dtype = query.dtype

    # ---- host-side layout prep: split the concat-matmul, pad D to a lane multiple,
    #      cast the streamed matmul operands to bf16 (f32 accumulation in-kernel).
    Dp = _round_up(D, 128)
    pad_d = Dp - D
    wp_in = wp.T                                                            # (2D, D)
    wq = jnp.pad(wp_in[:D], ((0, pad_d), (0, pad_d))).astype(matmul_dtype)  # (Dp, Dp)
    wk = jnp.pad(wp_in[D:], ((0, pad_d), (0, pad_d))).astype(matmul_dtype)  # (Dp, Dp)
    bp2 = jnp.pad(bp.reshape(1, D).astype(jnp.float32), ((0, 0), (0, pad_d)))
    h_row = jnp.pad(h.reshape(1, D).astype(jnp.float32), ((0, 0), (0, pad_d)))
    q_p = jnp.pad(query, ((0, 0), (0, pad_d))).astype(matmul_dtype)         # (B, Dp)
    k_p = jnp.pad(key, ((0, 0), (0, 0), (0, pad_d))).astype(matmul_dtype)   # (B, T, Dp)

    # ---- generation-aware tiling: size the batch block against VMEM.
    itemsize = jnp.dtype(matmul_dtype).itemsize
    vmem_cap, cores = _tpu_vmem_and_cores()
    vmem_limit = int(min(vmem_cap * 3 // 4, 96 << 20))     # ~48 MiB v7x, ~96 MiB v5e/v6e
    const_bytes = 2 * 2 * Dp * Dp * itemsize + 4 * 2 * Dp * 4   # Wq/Wk + bias/h (x2 bufs)
    budget = max(vmem_limit - const_bytes - (4 << 20), 1 << 20)
    tb = block_batch or _pick_block_batch(B, T, Dp, itemsize, budget, cores)
    assert B % tb == 0
    grid = (B // tb,)

    out_shapes = (
        jax.ShapeDtypeStruct((B, Dp), out_dtype),   # attention_vec (padded lanes)
        jax.ShapeDtypeStruct((B, T), out_dtype),    # attention_weight (lane-dense over T)
    )
    grid_spec = pltpu.PrefetchScalarGridSpec(
        num_scalar_prefetch=0,
        grid=grid,
        in_specs=[
            pl.BlockSpec((tb, Dp), lambda b: (b, 0)),        # query block
            pl.BlockSpec((tb, T, Dp), lambda b: (b, 0, 0)),  # key block (dominant stream)
            pl.BlockSpec((Dp, Dp), lambda b: (0, 0)),        # Wq (constant)
            pl.BlockSpec((Dp, Dp), lambda b: (0, 0)),        # Wk (constant)
            pl.BlockSpec((1, Dp), lambda b: (0, 0)),         # bias
            pl.BlockSpec((1, Dp), lambda b: (0, 0)),         # h (row vector)
        ],
        out_specs=[
            pl.BlockSpec((tb, Dp), lambda b: (b, 0)),
            pl.BlockSpec((tb, T), lambda b: (b, 0)),
        ],
    )
    vec_p, attn2d = pl.pallas_call(
        attention_kernel,
        out_shape=out_shapes,
        grid_spec=grid_spec,
        compiler_params=pltpu.CompilerParams(
            dimension_semantics=("parallel",),
            vmem_limit_bytes=vmem_limit),
    )(q_p, k_p, wq, wk, bp2, h_row)

    return vec_p[:, :D], attn2d.reshape(B, T, 1)


def attention_ref(query, key, wp, bp, h, matmul_dtype=jnp.float32):
    """Pure-JAX reference. matmul_dtype rounds the matmul/stream operands the same
    way the kernel does (bf16 quantization), with all math in f32."""
    B, T, D = key.shape
    f32 = jnp.float32
    qm = query.astype(matmul_dtype).astype(f32)
    km = key.astype(matmul_dtype).astype(f32)
    wm = wp.astype(matmul_dtype).astype(f32)
    q = jnp.broadcast_to(qm[:, None, :], (B, T, D))
    cat = jnp.concatenate([q, km], axis=-1)                  # (B, T, 2D)
    proj = jnp.maximum(cat @ wm.T + bp.astype(f32), 0.0)     # (B, T, D)
    alpha = proj @ h.astype(f32)                             # (B, T, 1)
    attn = jax.nn.softmax(alpha, axis=1)
    vec = jnp.sum(km * attn, axis=1)                         # (B, D)
    return vec, attn


if __name__ == "__main__":
    # dim == hidden is required by the module (Linear(hidden*2, hidden) on the concat).
    B, T, D = 4, 8, 32
    rng = jax.random.PRNGKey(0)
    kq, kk, kw, kb, kh = jax.random.split(rng, 5)

    query = jax.random.normal(kq, (B, D), dtype=jnp.float32)
    key = jax.random.normal(kk, (B, T, D), dtype=jnp.float32)

    # nn.Linear-style init for project_weight; torch.rand-style for h.
    bound = 1.0 / jnp.sqrt(2.0 * D)
    wp = jax.random.uniform(kw, (D, 2 * D), jnp.float32, -bound, bound)   # (out, in)
    bp = jax.random.uniform(kb, (D,), jnp.float32, -bound, bound)
    h = jax.random.uniform(kh, (D, 1), jnp.float32, 0.0, 1.0)

    vec, attn = attention_forward(query, key, wp, bp, h)
    vec, attn = jax.block_until_ready((vec, attn))
    assert vec.shape == (B, D) and attn.shape == (B, T, 1)

    # Check 1: against a reference with the same bf16-rounded matmul operands
    # (isolates the kernel's only quantization) -> tight tolerance.
    vec_r, attn_r = attention_ref(query, key, wp, bp, h, matmul_dtype=jnp.bfloat16)
    assert jnp.allclose(vec, vec_r, atol=2e-3, rtol=2e-3), "attention_vec mismatch (matched ref)"
    assert jnp.allclose(attn, attn_r, atol=2e-3, rtol=2e-3), "attention_weight mismatch (matched ref)"

    # Check 2: semantic sanity against the full-precision f32 reference.
    vec_f, attn_f = attention_ref(query, key, wp, bp, h, matmul_dtype=jnp.float32)
    assert jnp.allclose(vec, vec_f, atol=5e-2, rtol=5e-2), "attention_vec mismatch (f32 ref)"
    assert jnp.allclose(attn, attn_f, atol=5e-2, rtol=5e-2), "attention_weight mismatch (f32 ref)"

    print("KERNEL_OK")
</pallas_src>

<mosaic_0001>
module attributes {stable_mosaic.version = 11 : i64} {
  func.func @attention_kernel(%arg0: i32, %arg1: memref<4x128xbf16, #tpu.memory_space<vmem>>, %arg2: memref<4x8x128xbf16, #tpu.memory_space<vmem>>, %arg3: memref<128x128xbf16, #tpu.memory_space<vmem>>, %arg4: memref<128x128xbf16, #tpu.memory_space<vmem>>, %arg5: memref<1x128xf32, #tpu.memory_space<vmem>>, %arg6: memref<1x128xf32, #tpu.memory_space<vmem>>, %arg7: memref<4x128xf32, #tpu.memory_space<vmem>>, %arg8: memref<4x8xf32, #tpu.memory_space<vmem>>) attributes {dimension_semantics = [#tpu.dimension_semantics<parallel>], iteration_bounds = array<i64: 1>, scalar_prefetch = 0 : i64, scratch_operands = 0 : i64, tpu.core_type = #tpu.core_type<tc>, window_params = [{transform_indices = @transform_0, window_bounds = array<i64: 4, 128>}, {transform_indices = @transform_1, window_bounds = array<i64: 4, 8, 128>}, {pipeline_mode = #tpu.pipeline_mode<synchronous>, transform_indices = @transform_2, window_bounds = array<i64: 128, 128>}, {pipeline_mode = #tpu.pipeline_mode<synchronous>, transform_indices = @transform_3, window_bounds = array<i64: 128, 128>}, {pipeline_mode = #tpu.pipeline_mode<synchronous>, transform_indices = @transform_4, window_bounds = array<i64: 1, 128>}, {pipeline_mode = #tpu.pipeline_mode<synchronous>, transform_indices = @transform_5, window_bounds = array<i64: 1, 128>}, {transform_indices = @transform_6, window_bounds = array<i64: 4, 128>}, {transform_indices = @transform_7, window_bounds = array<i64: 4, 8>}]} {
    %c0 = arith.constant 0 : index
    %c0_0 = arith.constant 0 : index
    %0 = vector.load %arg1[%c0, %c0_0] : memref<4x128xbf16, #tpu.memory_space<vmem>>, vector<4x128xbf16>
    %c0_1 = arith.constant 0 : index
    %c0_2 = arith.constant 0 : index
    %c0_3 = arith.constant 0 : index
    %1 = vector.load %arg2[%c0_1, %c0_2, %c0_3] : memref<4x8x128xbf16, #tpu.memory_space<vmem>>, vector<4x8x128xbf16>
    %c0_4 = arith.constant 0 : index
    %c0_5 = arith.constant 0 : index
    %2 = vector.load %arg3[%c0_4, %c0_5] : memref<128x128xbf16, #tpu.memory_space<vmem>>, vector<128x128xbf16>
    %cst = arith.constant dense<0.000000e+00> : vector<4x128xf32>
    %3 = tpu.matmul %0, %2, %cst {dimension_numbers = #tpu.dot_dimension_numbers<[1], [0], [0], [1], [0, 0, 1, 1], [], []>} : vector<4x128xbf16>, vector<128x128xbf16>, vector<4x128xf32> -> vector<4x128xf32>
    %4 = vector.shape_cast %1 : vector<4x8x128xbf16> to vector<32x128xbf16>
    %c0_6 = arith.constant 0 : index
    %c0_7 = arith.constant 0 : index
    %5 = vector.load %arg4[%c0_6, %c0_7] : memref<128x128xbf16, #tpu.memory_space<vmem>>, vector<128x128xbf16>
    %cst_8 = arith.constant dense<0.000000e+00> : vector<32x128xf32>
    %6 = tpu.matmul %4, %5, %cst_8 {dimension_numbers = #tpu.dot_dimension_numbers<[1], [0], [0], [1], [0, 0, 1, 1], [], []>} : vector<32x128xbf16>, vector<128x128xbf16>, vector<32x128xf32> -> vector<32x128xf32>
    %7 = vector.shape_cast %6 : vector<32x128xf32> to vector<4x8x128xf32>
    %8 = vector.shape_cast %3 : vector<4x128xf32> to vector<4x1x128xf32>
    %9 = vector.broadcast %8 : vector<4x1x128xf32> to vector<4x8x128xf32>
    %10 = arith.addf %7, %9 : vector<4x8x128xf32>
    %c0_9 = arith.constant 0 : index
    %c0_10 = arith.constant 0 : index
    %11 = vector.load %arg5[%c0_9, %c0_10] : memref<1x128xf32, #tpu.memory_space<vmem>>, vector<1x128xf32>
    %12 = vector.shape_cast %11 : vector<1x128xf32> to vector<1x1x128xf32>
    %13 = vector.broadcast %12 : vector<1x1x128xf32> to vector<4x8x128xf32>
    %14 = arith.addf %10, %13 : vector<4x8x128xf32>
    %cst_11 = arith.constant 0.000000e+00 : f32
    %15 = vector.broadcast %cst_11 : f32 to vector<4x8x128xf32>
    %16 = arith.maximumf %14, %15 : vector<4x8x128xf32>
    %c0_12 = arith.constant 0 : index
    %c0_13 = arith.constant 0 : index
    %17 = vector.load %arg6[%c0_12, %c0_13] : memref<1x128xf32, #tpu.memory_space<vmem>>, vector<1x128xf32>
    %18 = vector.shape_cast %17 : vector<1x128xf32> to vector<1x1x128xf32>
    %19 = vector.broadcast %18 : vector<1x1x128xf32> to vector<4x8x128xf32>
    %20 = arith.mulf %16, %19 : vector<4x8x128xf32>
    %cst_14 = arith.constant dense<0.000000e+00> : vector<4x8xf32>
    %21 = vector.multi_reduction <add>, %20, %cst_14 [2] : vector<4x8x128xf32> to vector<4x8xf32>
    %cst_15 = arith.constant dense<0xFF800000> : vector<4xf32>
    %22 = vector.multi_reduction <maximumf>, %21, %cst_15 [1] : vector<4x8xf32> to vector<4xf32>
    %23 = vector.shape_cast %22 : vector<4xf32> to vector<4x1xf32>
    %24 = vector.broadcast %23 : vector<4x1xf32> to vector<4x8xf32>
    %25 = arith.subf %21, %24 : vector<4x8xf32>
    %26 = math.exp %25 : vector<4x8xf32>
    %cst_16 = arith.constant dense<0.000000e+00> : vector<4xf32>
    %27 = vector.multi_reduction <add>, %26, %cst_16 [1] : vector<4x8xf32> to vector<4xf32>
    %28 = vector.shape_cast %27 : vector<4xf32> to vector<4x1xf32>
    %29 = tpu.reciprocal %28 : vector<4x1xf32> -> vector<4x1xf32>
    %30 = vector.broadcast %29 : vector<4x1xf32> to vector<4x8xf32>
    %31 = arith.mulf %26, %30 : vector<4x8xf32>
    %c0_17 = arith.constant 0 : index
    %c0_18 = arith.constant 0 : index
    %32 = vector.load %arg8[%c0_17, %c0_18] : memref<4x8xf32, #tpu.memory_space<vmem>>, vector<4x8xf32>
    tpu.vector_store %arg8[%c0_17, %c0_18], %31 {strides = array<i32>} : memref<4x8xf32, #tpu.memory_space<vmem>>, vector<4x8xf32>,
    %33 = arith.extf %1 : vector<4x8x128xbf16> to vector<4x8x128xf32>
    %34 = vector.shape_cast %31 : vector<4x8xf32> to vector<4x8x1xf32>
    %35 = vector.broadcast %34 : vector<4x8x1xf32> to vector<4x8x128xf32>
    %36 = arith.mulf %33, %35 : vector<4x8x128xf32>
    %cst_19 = arith.constant dense<0.000000e+00> : vector<4x128xf32>
    %37 = vector.multi_reduction <add>, %36, %cst_19 [1] : vector<4x8x128xf32> to vector<4x128xf32>
    %c0_20 = arith.constant 0 : index
    %c0_21 = arith.constant 0 : index
    %38 = vector.load %arg7[%c0_20, %c0_21] : memref<4x128xf32, #tpu.memory_space<vmem>>, vector<4x128xf32>
    tpu.vector_store %arg7[%c0_20, %c0_21], %37 {strides = array<i32>} : memref<4x128xf32, #tpu.memory_space<vmem>>, vector<4x128xf32>,
    return
  }
  func.func @transform_0(%arg0: i32) -> (i32, i32) {
    %c0_i32 = arith.constant 0 : i32
    %c0_i32_0 = arith.constant 0 : i32
    return %arg0, %c0_i32 : i32, i32
  }
  func.func @transform_1(%arg0: i32) -> (i32, i32, i32) {
    %c0_i32 = arith.constant 0 : i32
    %c0_i32_0 = arith.constant 0 : i32
    %c0_i32_1 = arith.constant 0 : i32
    return %arg0, %c0_i32, %c0_i32_0 : i32, i32, i32
  }
  func.func @transform_2(%arg0: i32) -> (i32, i32) {
    %c0_i32 = arith.constant 0 : i32
    %c0_i32_0 = arith.constant 0 : i32
    %c0_i32_1 = arith.constant 0 : i32
    return %c0_i32, %c0_i32_0 : i32, i32
  }
  func.func @transform_3(%arg0: i32) -> (i32, i32) {
    %c0_i32 = arith.constant 0 : i32
    %c0_i32_0 = arith.constant 0 : i32
    %c0_i32_1 = arith.constant 0 : i32
    return %c0_i32, %c0_i32_0 : i32, i32
  }
  func.func @transform_4(%arg0: i32) -> (i32, i32) {
    %c0_i32 = arith.constant 0 : i32
    %c0_i32_0 = arith.constant 0 : i32
    %c0_i32_1 = arith.constant 0 : i32
    return %c0_i32, %c0_i32_0 : i32, i32
  }
  func.func @transform_5(%arg0: i32) -> (i32, i32) {
    %c0_i32 = arith.constant 0 : i32
    %c0_i32_0 = arith.constant 0 : i32
    %c0_i32_1 = arith.constant 0 : i32
    return %c0_i32, %c0_i32_0 : i32, i32
  }
  func.func @transform_6(%arg0: i32) -> (i32, i32) {
    %c0_i32 = arith.constant 0 : i32
    %c0_i32_0 = arith.constant 0 : i32
    return %arg0, %c0_i32 : i32, i32
  }
  func.func @transform_7(%arg0: i32) -> (i32, i32) {
    %c0_i32 = arith.constant 0 : i32
    %c0_i32_0 = arith.constant 0 : i32
    return %arg0, %c0_i32 : i32, i32
  }
}

</mosaic_0001>

<bundles_post_ra>
// kernel: tpu_custom_call.1
= control target key start
LH: loop header
LB: loop body
LE: loop exit
PB: predicated region body
PF: predicated region fallthrough
CT: control target
= control target key end

     0   :  { %13 = vsyncpa [#allocation3], 0  ;;  %s1035_s0 = inlined_call_operand.hbm [shape: bf16[4,128], index: 0, kind: input, shape index: {}]   ;;  %s1036_s1 = inlined_call_operand.hbm [shape: bf16[4,8,128], index: 1, kind: input, shape index: {}]   ;;  %s1037_s2 = inlined_call_operand.hbm [shape: bf16[128,128], index: 2, kind: input, shape index: {}]   ;;  %s1038_s3 = inlined_call_operand.hbm [shape: bf16[128,128], index: 3, kind: input, shape index: {}]   ;;  %s1039_s4 = inlined_call_operand.vmem [shape: f32[1,128], index: 4, kind: input, shape index: {}]   ;;  %s1040_s5 = inlined_call_operand.vmem [shape: f32[1,128], index: 5, kind: input, shape index: {}]   ;;  %s1041_s6 = inlined_call_operand.hbm [shape: f32[4,128], index: 6, kind: output, shape index: {0}]   ;;  %s1042_s7 = inlined_call_operand.hbm [shape: f32[4,8], index: 7, kind: output, shape index: {1}]  }
   0x1   :  { %14 = vsyncpa [#allocation6], 0 }
   0x2   :  { %15 = vsyncpa [#allocation9], 0 }
   0x3   :  { %16 = vsyncpa [#allocation4], 0 }
   0x4   :  { %17 = vsyncpa [#allocation12], 0  ;;  %s895_s24 = smov [#allocation5]  }
   0x5   :  { %s33_s25 = sshll.u32 %s895_s24, 4  ;;  %s34_s25 = int_to_ptr.vmem [resolvable:$true] %s33_s25 }
   0x6   :  { %s773_s26 = scalar_lea.vmem %s34_s25, 256  ;;  %p778_p1 = scmp.lt.s32.totalorder %s34_s25, %s34_s25 }
   0x7   :  { %p774_p0 = scmp.ne.s32.totalorder %s34_s25, %s773_s26  ;;  %p779_p2 = scmp.lt.s32.totalorder %s773_s26, %s773_s26 }
   0x9   :  { %p780_p3 = por %p779_p2, %p778_p1 }
   0xb   :  { %p781_p4 = pnand %p780_p3, %p774_p0 }
   0xd   :  { %784 = shalt.err (!%p781_p4)
}
   0xe   :  { %s896_s27 = smov 64   ;;  %s897_s28 = smov 4  }
   0xf   :  { %39 = dma.hbm_to_vmem [thread:$0]  %s1036_s1, 256, %s34_s25, [#allocation6], %s896_s27, %s896_s27, %s897_s28  }
  0x10   :  { %s898_s8 = smov [#allocation2]   ;;  %s899_s10 = smov [#allocation7]  }
  0x11   :  { %s24_s9 = sshll.u32 %s898_s8, 4  ;;  %s45_s11 = sshll.u32 %s899_s10, 4  ;;  %s25_s9 = int_to_ptr.vmem [resolvable:$true] %s24_s9  ;;  %s46_s11 = int_to_ptr.vmem [resolvable:$true] %s45_s11 }
  0x12   :  { %s793_s12 = scalar_lea.vmem %s25_s9, 32  ;;  %p798_p6 = scmp.lt.s32.totalorder %s25_s9, %s25_s9 }
  0x13   :  { %p794_p5 = scmp.ne.s32.totalorder %s25_s9, %s793_s12  ;;  %p799_p7 = scmp.lt.s32.totalorder %s793_s12, %s793_s12 }
  0x15   :  { %p800_p8 = por %p799_p7, %p798_p6 }
  0x17   :  { %p801_p9 = pnand %p800_p8, %p794_p5 }
  0x19   :  { %804 = shalt.err (!%p801_p9)
}
  0x1a   :  { %27 = dma.hbm_to_vmem [thread:$0]  %s1035_s0, 32, %s25_s9, [#allocation3]  }
  0x1b   :  { %s813_s15 = scalar_lea.vmem %s46_s11, 1024  ;;  %p818_p11 = scmp.lt.s32.totalorder %s46_s11, %s46_s11 }
  0x1c   :  { %p814_p10 = scmp.ne.s32.totalorder %s46_s11, %s813_s15  ;;  %p819_p12 = scmp.lt.s32.totalorder %s813_s15, %s813_s15 }
  0x1e   :  { %p820_p13 = por %p819_p12, %p818_p11 }
  0x20   :  { %p821_p0 = pnand %p820_p13, %p814_p10 }
  0x22   :  { %824 = shalt.err (!%p821_p0)
}
  0x23   :  { %51 = dma.hbm_to_vmem [thread:$0]  %s1037_s2, 1024, %s46_s11, [#allocation6], %s896_s27, %s896_s27, %s897_s28  }
  0x24   :  { %s900_s17 = smov [#allocation8]  }
  0x25   :  { %s57_s18 = sshll.u32 %s900_s17, 4  ;;  %s58_s18 = int_to_ptr.vmem [resolvable:$true] %s57_s18 }
  0x26   :  { %s833_s19 = scalar_lea.vmem %s58_s18, 1024  ;;  %p838_p2 = scmp.lt.s32.totalorder %s58_s18, %s58_s18 }
  0x27   :  { %p834_p1 = scmp.ne.s32.totalorder %s58_s18, %s833_s19  ;;  %p839_p3 = scmp.lt.s32.totalorder %s833_s19, %s833_s19 }
  0x29   :  { %p840_p4 = por %p839_p3, %p838_p2 }
  0x2b   :  { %p841_p5 = pnand %p840_p4, %p834_p1 }
  0x2d   :  { %844 = shalt.err (!%p841_p5)
}
  0x2e   :  { %63 = dma.hbm_to_vmem [thread:$0]  %s1038_s3, 1024, %s58_s18, [#allocation9], %s896_s27, %s896_s27, %s897_s28  }
  0x2f   :  { %885 = dma.done.wait [#allocation3], 32  }
  0x30   :  { %886 = vsyncadd [#allocation3], 4294967264 }
  0x31   :  { %887 = dma.done.wait [#allocation6], 1280  }
  0x32   :  { %888 = vsyncadd [#allocation6], 4294966016 }
  0x33   :  { %889 = dma.done.wait [#allocation9], 1024  }
  0x34   :  { %890 = vsyncadd [#allocation9], 4294966272  ;;  %v901_v0 = vmov 0.0   ;;  %vm902_vm0 = vmmov 0   ;;  %v735_v1 = vld [vmem:[#allocation7 + $0x38] sm:$0xff]   ;;  %v737_v3 = vld [vmem:[#allocation7 + $0x30] sm:$0xff]   ;;  %v319_v22 = vlaneseq }
  0x35   :  { %681 = vmatprep.subr.bf16.mxu0 %v901_v0  ;;  %697 = vmatprep.mubr.msk.bf16.mxu0 %vm902_vm0, %v901_v0  ;;  %v736_v2 = vld [vmem:[#allocation8 + $0x38] sm:$0xff]   ;;  %v738_v4 = vld [vmem:[#allocation8 + $0x30] sm:$0xff]   ;;  %v740_v5 = vld [vmem:[#allocation8 + $0x28] sm:$0xff]   ;;  %v903_v20 = vmov 1966171168   ;;  %vm420_vm1 = vcmask 1041409  }
  0x36   :  { %682 = vmatpush3.bf16.msra.mxu0 %v735_v1  ;;  %701 = vmatprep.subr.bf16.mxu1 %v736_v2  ;;  %v739_v6 = vld [vmem:[#allocation7 + $0x28] sm:$0xff]   ;;  %v742_v7 = vld [vmem:[#allocation8 + $0x20] sm:$0xff]   ;;  %v744_v9 = vld [vmem:[#allocation8 + $0x18] sm:$0xff]   ;;  %v317_v21 = vunpack.c.l.s4 %v903_v20  ;;  %v974_v24 = vshrl.u32 %v319_v22, 7  ;;  %v403_v63 = vand.u32 127, %v319_v22  ;;  %vm422_vm2 = vcmask 1042434  }
  0x37   :  { %683 = vmatprep.subr.bf16.mxu0 %v901_v0  ;;  %702 = vmatpush3.bf16.msra.mxu1 %v736_v2  ;;  %v741_v8 = vld [vmem:[#allocation7 + $0x20] sm:$0xff]   ;;  %v743_v10 = vld [vmem:[#allocation7 + $0x18] sm:$0xff]   ;;  %v968_v11 = vld [vmem:[#allocation5] sm:$0xff]   ;;  %vm424_vm3 = vcmask 1043459   ;;  %vm427_vm4 = vcmask 60416  }
  0x38   :  { %703 = vmatprep.subr.bf16.mxu1 %v738_v4  ;;  %v746_v12 = vld [vmem:[#allocation8 + $0x10] sm:$0xff]   ;;  %717 = vmatprep.mubr.bf16.mxu1 %v968_v11  ;;  %v748_v14 = vld [vmem:[#allocation8 + $0x8] sm:$0xff]   ;;  %v750_v16 = vld [vmem:[#allocation8] sm:$0xff]   ;;  %v318_v23 = vunpack.c.0.s8 %v317_v21  ;;  %v978_v28 = vsub.s32 0, %v974_v24  ;;  %v991_v1 = vsub.s32 %v403_v63, %v974_v24 }
  0x39   :  { %v745_v13 = vld [vmem:[#allocation7 + $0x10] sm:$0xff]   ;;  %v747_v15 = vld [vmem:[#allocation7 + $0x8] sm:$0xff]   ;;  %v749_v17 = vld [vmem:[#allocation7] sm:$0xff]  }
  0x3a   :  { %684 = vmatpush3.bf16.msra.mxu0 %v737_v3  ;;  %v971_v18 = vld [vmem:[#allocation5 + $0x8] sm:$0xff]   ;;  %v81_v19 = vld [vmem:[#allocation2] sm:$0x3]  ;;  %v321_v25 = vsub.s32 %v318_v23, %v974_v24 }
  0x3b   :  { %685 = vmatprep.subr.bf16.mxu0 %v901_v0  ;;  %704 = vmatpush3.bf16.msra.mxu1 %v738_v4  ;;  %v660_v39 = vld [vmem:[%s1039_s4] ss:$0 sm:$0xff]  ;;  %s905_s4 = smov [#allocation11]  }
  0x3c   :  { %705 = vmatprep.subr.bf16.mxu1 %v740_v5  ;;  %v661_v50 = vld [vmem:[%s1040_s5] ss:$0 sm:$0xff]  ;;  %s627_s5 = sshll.u32 %s905_s4, 4  ;;  %s628_s5 = int_to_ptr.vmem [resolvable:$true] %s627_s5 }
  0x3d   :  { %s845_s23 = scalar_lea.vmem %s628_s5, 64  ;;  %p850_p7 = scmp.lt.s32.totalorder %s628_s5, %s628_s5 }
  0x3e   :  { %686 = vmatpush3.bf16.msra.mxu0 %v739_v6  ;;  %p846_p6 = scmp.ne.s32.totalorder %s628_s5, %s845_s23  ;;  %p851_p8 = scmp.lt.s32.totalorder %s845_s23, %s845_s23 }
  0x3f   :  { %687 = vmatprep.subr.bf16.mxu0 %v901_v0  ;;  %706 = vmatpush3.bf16.msra.mxu1 %v740_v5 }
  0x40   :  { %707 = vmatprep.subr.bf16.mxu1 %v742_v7  ;;  %p852_p9 = por %p851_p8, %p850_p7 }
  0x42   :  { %688 = vmatpush3.bf16.msra.mxu0 %v741_v8  ;;  %p853_p10 = pnand %p852_p9, %p846_p6 }
  0x43   :  { %689 = vmatprep.subr.bf16.mxu0 %v901_v0  ;;  %708 = vmatpush3.bf16.msra.mxu1 %v742_v7 }
  0x44   :  { %709 = vmatprep.subr.bf16.mxu1 %v744_v9 }
  0x46   :  { %690 = vmatpush3.bf16.msra.mxu0 %v743_v10 }
  0x47   :  { %691 = vmatprep.subr.bf16.mxu0 %v901_v0  ;;  %710 = vmatpush3.bf16.msra.mxu1 %v744_v9 }
  0x48   :  { %711 = vmatprep.subr.bf16.mxu1 %v746_v12 }
  0x4a   :  { %692 = vmatpush3.bf16.msra.mxu0 %v745_v13 }
  0x4b   :  { %693 = vmatprep.subr.bf16.mxu0 %v901_v0  ;;  %712 = vmatpush3.bf16.msra.mxu1 %v746_v12 }
  0x4c   :  { %713 = vmatprep.subr.bf16.mxu1 %v748_v14 }
  0x4e   :  { %694 = vmatpush3.bf16.msra.mxu0 %v747_v15  ;;  %v438_v15 = vsub.s32 1, %v974_v24 }
  0x4f   :  { %695 = vmatprep.subr.bf16.mxu0 %v901_v0  ;;  %714 = vmatpush3.bf16.msra.mxu1 %v748_v14  ;;  %v904_v14 = vmov 0  }
  0x50   :  { %715 = vmatprep.subr.bf16.mxu1 %v750_v16  ;;  %734 = vset.pattern.permute.xlu0 %v904_v14 }
  0x51   :  { %733 = vset.pattern.permute.xlu1 %v904_v14 }
  0x52   :  { %696 = vmatpush3.bf16.msra.mxu0 %v749_v17  ;;  %v446_v17 = vsub.s32 3, %v974_v24 }
  0x53   :  { %716 = vmatpush3.bf16.msra.mxu1 %v750_v16  ;;  %v442_v16 = vsub.s32 2, %v974_v24 }
  0x55   :  { %698 = vmatmul.mubr.bf16.vlgmr.msra.gmra.mxu0 %v81_v19 }
  0x56   :  { %718 = vmatmul.mubr.bf16.vlgmr.msra.gmra.mxu1 %v971_v18 }
 0x115   :  { %v184_v26 = vpop.f32.mrf.mxu0 }
 0x116   :  { %v322_v27 = vrot.slane %v184_v26, %v321_v25  ;;  %v719_v29 = vpop.f32.mrf.mxu1 }
 0x117   :  { %v699_v30 = vpop.f32.mrf.mxu0 }
 0x118   :  { %v323_v31 = vcombine.high %v322_v27, %v322_v27  ;;  %v330_v32 = vrot.slane %v322_v27, %v321_v25  ;;  %v300_v33 = vpop.f32.mrf.mxu1 }
 0x119   :  { %v187_v34 = vpop.f32.mrf.mxu0 }
 0x11a   :  { %v337_v35 = vrot.slane %v323_v31, %v321_v25  ;;  %v338_v36 = vcombine.high %v330_v32, %v330_v32  ;;  %v343_v37 = vrot.slane %v330_v32, %v978_v28  ;;  %v720_v38 = vpop.f32.mrf.mxu1 }
 0x11b   :  { %v700_v40 = vpop.f32.mrf.mxu0 }
 0x11c   :  { %v351_v41 = vrot.slane %v338_v36, %v978_v28  ;;  %v360_v42 = vadd.f32 %v343_v37, %v300_v33  ;;  %v339_v43 = vcombine.high %v337_v35, %v337_v35  ;;  %v347_v44 = vrot.slane %v337_v35, %v978_v28  ;;  %v303_v45 = vpop.f32.mrf.mxu1 }
 0x11e   :  { %v362_v46 = vadd.f32 %v719_v29, %v351_v41  ;;  %v355_v47 = vrot.slane %v339_v43, %v978_v28  ;;  %v361_v48 = vadd.f32 %v347_v44, %v303_v45  ;;  %v371_v49 = vadd.f32 %v660_v39, %v360_v42 }
 0x120   :  { %v363_v51 = vadd.f32 %v720_v38, %v355_v47  ;;  %v372_v52 = vadd.f32 %v660_v39, %v361_v48  ;;  %v375_v53 = vmax.f32 %v371_v49, 0.0  ;;  %v373_v54 = vadd.f32 %v660_v39, %v362_v46 }
 0x122   :  { %v374_v55 = vadd.f32 %v660_v39, %v363_v51  ;;  %v376_v56 = vmax.f32 %v372_v52, 0.0  ;;  %v386_v57 = vmul.f32 %v661_v50, %v375_v53  ;;  %v377_v58 = vmax.f32 %v373_v54, 0.0 }
 0x124   :  { %v378_v59 = vmax.f32 %v374_v55, 0.0  ;;  %390 = vadd.xlane.f32.xlu0 %v386_v57  ;;  %v388_v60 = vmul.f32 %v661_v50, %v377_v58  ;;  %v387_v61 = vmul.f32 %v661_v50, %v376_v56 }
 0x126   :  { %394 = vadd.xlane.f32.xlu1 %v388_v60  ;;  %v389_v62 = vmul.f32 %v661_v50, %v378_v59  ;;  %v566_v59 = vunpack.c.l.bf16 %v968_v11 }
 0x128   :  { %392 = vadd.xlane.f32.xlu0 %v387_v61  ;;  %v567_v61 = vunpack.c.h.bf16 %v968_v11 }
 0x12a   :  { %396 = vadd.xlane.f32.xlu1 %v389_v62 }
 0x1ad   :  { %v391_v0 = vpop.xlane.xlu0 %390 }
 0x1ae   :  { %v407_v4 = vrot.slane %v391_v0, %v991_v1 }
 0x1af   :  { %v395_v2 = vpop.xlane.xlu1 %394 }
 0x1b0   :  { %v415_v6 = vrot.slane %v395_v2, %v991_v1 }
 0x1b1   :  { %v393_v3 = vpop.xlane.xlu0 %392 }
 0x1b2   :  { %v411_v5 = vrot.slane %v393_v3, %v991_v1 }
 0x1b3   :  { %v397_v7 = vpop.xlane.xlu1 %396 }
 0x1b4   :  { %v419_v8 = vrot.slane %v397_v7, %v991_v1  ;;  %v421_v9 = vsel %vm420_vm1, %v411_v5, %v407_v4 }
 0x1b5   :  { %v423_v10 = vsel %vm422_vm2, %v415_v6, %v421_v9 }
 0x1b6   :  { %v425_v12 = vsel %vm424_vm3, %v419_v8, %v423_v10  ;;  %v569_v10 = vunpack.c.h.bf16 %v971_v18 }
 0x1b7   :  { %v428_v13 = vsel %vm427_vm4, %v425_v12, -inf }
 0x1b8   :  { %429 = vmax.xlane.f32.xlu0 %v428_v13 }
 0x241   :  { %v430_v19 = vpop.xlane.xlu0 %429 }
 0x242   :  { %v435_v20 = vrot.slane %v430_v19, %v978_v28  ;;  %v439_v21 = vrot.slane %v430_v19, %v438_v15  ;;  %v443_v22 = vrot.slane %v430_v19, %v442_v16  ;;  %v447_v23 = vrot.slane %v430_v19, %v446_v17 }
 0x244   :  { %v452_v25 = vsub.f32 %v391_v0, %v435_v20  ;;  %v453_v26 = vsub.f32 %v393_v3, %v439_v21  ;;  %v454_v27 = vsub.f32 %v395_v2, %v443_v22  ;;  %v455_v31 = vsub.f32 %v397_v7, %v447_v23 }
 0x245   :  { %v568_v2 = vunpack.c.l.bf16 %v971_v18 }
 0x246   :  { %v456_v29 = vmul.f32 1.442695, %v452_v25  ;;  %v458_v30 = vmul.f32 1.442695, %v453_v26  ;;  %v460_v32 = vmul.f32 1.442695, %v454_v27 }
 0x247   :  { %v462_v33 = vmul.f32 1.442695, %v455_v31 }
 0x248   :  { %755 = vpow2.f32 %v456_v29 }
 0x249   :  { %757 = vpow2.f32 %v458_v30 }
 0x24a   :  { %759 = vpow2.f32 %v460_v32 }
 0x24b   :  { %761 = vpow2.f32 %v462_v33 }
 0x255   :  { %v756_v34 = vpop.eup %755 }
 0x256   :  { %v758_v24 = vpop.eup %757  ;;  %469 = vperm.xlu1 %733, %v756_v34  }
 0x257   :  { %472 = vperm.xlu0 %734, %v758_v24   ;;  %v760_v35 = vpop.eup %759 }
 0x258   :  { %v762_v36 = vpop.eup %761 }
 0x25a   :  { %475 = vperm.xlu1 %733, %v760_v35  }
 0x25e   :  { %478 = vperm.xlu1 %733, %v762_v36  }
 0x2d1   :  { %v470_v37 = vpop.permute.xlu1 %469 }
 0x2d2   :  { %v473_v38 = vpop.permute.xlu0 %472  ;;  %v483_v41 = vrot.slane %v470_v37, %v991_v1 }
 0x2d3   :  { %v487_v40 = vrot.slane %v473_v38, %v991_v1 }
 0x2d5   :  { %v476_v39 = vpop.permute.xlu1 %475  ;;  %v496_v44 = vsel %vm420_vm1, %v487_v40, %v483_v41 }
 0x2d6   :  { %v491_v42 = vrot.slane %v476_v39, %v991_v1 }
 0x2d8   :  { %v497_v46 = vsel %vm422_vm2, %v491_v42, %v496_v44 }
 0x2d9   :  { %v479_v43 = vpop.permute.xlu1 %478 }
 0x2da   :  { %v495_v45 = vrot.slane %v479_v43, %v991_v1 }
 0x2dc   :  { %v498_v47 = vsel %vm424_vm3, %v495_v45, %v497_v46 }
 0x2dd   :  { %v500_v48 = vsel %vm427_vm4, %v498_v47, 0.0 }
 0x2de   :  { %501 = vadd.xlane.f32.xlu1 %v500_v48 }
 0x367   :  { %v502_v49 = vpop.xlane.xlu1 %501 }
 0x368   :  { %763 = vrcp.f32 %v502_v49 }
 0x375   :  { %v764_v50 = vpop.eup %763 }
 0x376   :  { %v508_v51 = vrot.slane %v764_v50, %v978_v28  ;;  %v512_v53 = vrot.slane %v764_v50, %v438_v15  ;;  %v516_v55 = vrot.slane %v764_v50, %v442_v16  ;;  %v520_v57 = vrot.slane %v764_v50, %v446_v17 }
 0x378   :  { %v525_v52 = vmul.f32 %v756_v34, %v508_v51  ;;  %v526_v54 = vmul.f32 %v758_v24, %v512_v53  ;;  %v527_v56 = vmul.f32 %v760_v35, %v516_v55  ;;  %v528_v58 = vmul.f32 %v762_v36, %v520_v57 }
 0x37a   :  { %534 = vperm.xlu0 %734, %v525_v52  }
 0x37e   :  { %537 = vperm.xlu0 %734, %v526_v54  }
 0x382   :  { %540 = vperm.xlu0 %734, %v527_v56  }
 0x386   :  { %543 = vperm.xlu0 %734, %v528_v58  }
 0x3f5   :  { %v535_v60 = vpop.permute.xlu0 %534 }
 0x3f6   :  { %v574_v62 = vmul.f32 %v566_v59, %v535_v60  ;;  %v548_v12 = vrot.slane %v535_v60, %v991_v1 }
 0x3f8   :  { %v578_v63 = vrot.slane %v574_v62, 4 }
 0x3f9   :  { %v538_v0 = vpop.permute.xlu0 %537 }
 0x3fa   :  { %v575_v28 = vmul.f32 %v567_v61, %v538_v0  ;;  %v579_v4 = vadd.f32 %v578_v63, %v574_v62  ;;  %v552_v6 = vrot.slane %v538_v0, %v991_v1 }
 0x3fc   :  { %v584_v3 = vrot.slane %v575_v28, 4  ;;  %v580_v14 = vrot.slane %v579_v4, 2  ;;  %v561_v16 = vsel %vm420_vm1, %v552_v6, %v548_v12 }
 0x3fd   :  { %v541_v5 = vpop.permute.xlu0 %540 }
 0x3fe   :  { %v585_v7 = vadd.f32 %v584_v3, %v575_v28  ;;  %v576_v8 = vmul.f32 %v568_v2, %v541_v5  ;;  %v556_v9 = vrot.slane %v541_v5, %v991_v1  ;;  %v581_v25 = vadd.f32 %v580_v14, %v579_v4 }
 0x400   :  { %v586_v11 = vrot.slane %v585_v7, 2  ;;  %v590_v13 = vrot.slane %v576_v8, 4  ;;  %v562_v22 = vsel %vm422_vm2, %v556_v9, %v561_v16 }
 0x401   :  { %v544_v15 = vpop.permute.xlu0 %543 }
 0x402   :  { %v591_v17 = vadd.f32 %v590_v13, %v576_v8  ;;  %v560_v19 = vrot.slane %v544_v15, %v991_v1  ;;  %v587_v20 = vadd.f32 %v586_v11, %v585_v7  ;;  %v577_v21 = vmul.f32 %v569_v10, %v544_v15 }
 0x404   :  { %v592_v23 = vrot.slane %v591_v17, 2  ;;  %v563_v18 = vsel %vm424_vm3, %v560_v19, %v562_v22  ;;  %v596_v26 = vrot.slane %v577_v21, 4 }
 0x405   :  { %565 = vst.msk [vmem:[#allocation11] sm:$0xf] %vm427_vm4, %v563_v18 }
 0x406   :  { %v593_v27 = vadd.f32 %v592_v23, %v591_v17 }
 0x407   :  { %856 = shalt.err (!%p853_p10)
}
 0x408   :  { %630 = dma.vmem_to_hbm [thread:$0]  %s628_s5, 64, %s1042_s7, [#allocation12]   ;;  %v588_v1 = vrot.slane %v587_v20, 1  ;;  %v597_v29 = vadd.f32 %v596_v26, %v577_v21  ;;  %v594_v30 = vrot.slane %v593_v27, 1  ;;  %v582_v31 = vrot.slane %v581_v25, 1 }
 0x409   :  { %s906_s26 = smov [#allocation10]  }
 0x40a   :  { %v598_v32 = vrot.slane %v597_v29, 2  ;;  %v589_v33 = vadd.f32 %v588_v1, %v587_v20  ;;  %v595_v24 = vadd.f32 %v594_v30, %v593_v27  ;;  %v583_v35 = vadd.f32 %v582_v31, %v581_v25  ;;  %s617_s27 = sshll.u32 %s906_s26, 4  ;;  %s618_s27 = int_to_ptr.vmem [resolvable:$true] %s617_s27 }
 0x40b   :  { %s865_s7 = scalar_lea.vmem %s618_s27, 64  ;;  %p870_p12 = scmp.lt.s32.totalorder %s618_s27, %s618_s27 }
 0x40c   :  { %v599_v34 = vadd.f32 %v598_v32, %v597_v29  ;;  %v606_v38 = vsel %vm420_vm1, %v589_v33, %v583_v35  ;;  %p866_p11 = scmp.ne.s32.totalorder %s618_s27, %s865_s7  ;;  %p871_p13 = scmp.lt.s32.totalorder %s865_s7, %s865_s7 }
 0x40d   :  { %v607_v39 = vsel %vm422_vm2, %v595_v24, %v606_v38 }
 0x40e   :  { %v600_v36 = vrot.slane %v599_v34, 1  ;;  %p872_p0 = por %p871_p13, %p870_p12 }
 0x410   :  { %v601_v37 = vadd.f32 %v600_v36, %v599_v34  ;;  %p873_p1 = pnand %p872_p0, %p866_p11 }
 0x412   :  { %v608_v40 = vsel %vm424_vm3, %v601_v37, %v607_v39 }
 0x413   :  { %610 = vst [vmem:[#allocation10] sm:$0xf] %v608_v40 }
 0x414   :  { %876 = shalt.err (!%p873_p1)
}
 0x415   :  { %620 = dma.vmem_to_hbm [thread:$0]  %s618_s27, 64, %s1041_s6, [#allocation4]  }
 0x416   :  { %891 = dma.done.wait [#allocation4], 64  }
 0x417   :  { %892 = vsyncadd [#allocation4], 4294967232 }
 0x418   :  { %893 = dma.done.wait [#allocation12], 64  }
 0x419   :  { %894 = vsyncadd [#allocation12], 4294967232 }
 0x41a   :  { %637 = vsyncpa [#allocation3], 1 }
 0x41b   :  { %638 = vsyncpa [#allocation6], 1 }
 0x41c   :  { %639 = vsyncpa [#allocation9], 1 }
 0x41d   :  { %640 = vsyncpa [#allocation4], 1 }
 0x41e   :  { %641 = vsyncpa [#allocation12], 1 }

</bundles_post_ra>
